<compile_context>
chip_gen: v7x
topology: tpu7x:2x2x1
jax: 0.10.0
libtpu: 0.0.40
codegen_flags: <defaults>
</compile_context>

<pallas_src>
import functools

import jax
import jax.numpy as jnp
from jax.experimental import pallas as pl
from jax.experimental.pallas import tpu as pltpu


def _gap_fc_kernel(x_ref, w_ref, b_ref, o_ref, acc_ref, *, inv_hw):
    """One (class-tile j, channel-tile l) step of fused avgpool + fc.

    x_ref:   (N, c_blk, HW)  feature-map channel tile, full spatial extent
    w_ref:   (c_blk, k_blk)  fc weight tile, already laid out as (C, K)
    b_ref:   (1, k_blk)      fc bias tile
    o_ref:   (N, k_blk)      output logits tile (resident across channel axis)
    acc_ref: (N, k_blk) f32  VMEM accumulator scratch
    """
    l = pl.program_id(1)  # channel-reduction axis (last grid axis)

    @pl.when(l == 0)
    def _():
        acc_ref[...] = jnp.zeros_like(acc_ref)

    # Global average pool over the flattened spatial axis for this channel
    # tile (VPU/XLU), then accumulate the classifier contraction on the MXU.
    pooled = jnp.sum(x_ref[...].astype(jnp.float32), axis=-1) * inv_hw  # (N, c_blk)
    acc_ref[...] += jnp.dot(
        pooled, w_ref[...].astype(jnp.float32),
        preferred_element_type=jnp.float32,
    )

    @pl.when(l == pl.num_programs(1) - 1)
    def _():
        o_ref[...] = (acc_ref[...] + b_ref[...].astype(jnp.float32)).astype(o_ref.dtype)


def xception_head(x, fc_weight, fc_bias, *, vmem_tile_budget=8 * 1024 * 1024):
    """Pallas equivalent of CustomXceptionNet's `avgpool` + `fc` tail.

    x:         (N, C, H, W)  feature map (NCHW, as produced by relu4)
    fc_weight: (num_classes, C)  -- PyTorch nn.Linear layout
    fc_bias:   (num_classes,)
    returns:   (N, num_classes) logits
    """
    n, c, h, w = x.shape
    hw = h * w
    k = fc_weight.shape[0]
    assert fc_weight.shape == (k, c)
    assert fc_bias.shape == (k,)

    # Metadata-only row-major flatten (== torch .view on contiguous NCHW).
    # No copy kernel / no extra HBM round trip.
    x3 = jnp.reshape(x, (n, c, hw))
    # Weight as (C, K) so the contraction is pooled(N, Cb) @ w(Cb, Kb).
    w_t = jnp.transpose(fc_weight)          # (C, K)
    b2 = jnp.reshape(fc_bias, (1, k))       # (1, K)

    # ---- tile selection -------------------------------------------------
    # Class (output/lane) tile: largest 128-multiple divisor -> unmasked
    # full-vreg stores; fall back to the full extent (always legal).
    k_blk = k
    for cand in (512, 256, 128):
        if k % cand == 0:
            k_blk = cand
            break

    # Channel tile: largest multiple-of-8 divisor of C whose double-buffered
    # input + weight tiles fit a conservative VMEM budget (keeps the kernel
    # pipelined and comfortably under v7x's 64 MiB / 32 MiB scoped default).
    x_item = x.dtype.itemsize
    w_item = w_t.dtype.itemsize
    c_blk = c  # full-extent fallback (always legal)
    for cand in (2048, 1024, 512, 256, 128, 64, 32, 16, 8):
        if c % cand != 0:
            continue
        tile_bytes = 2 * (n * cand * hw * x_item + cand * k_blk * w_item)
        if tile_bytes <= vmem_tile_budget:
            c_blk = cand
            break

    grid = (k // k_blk, c // c_blk)
    kernel = functools.partial(_gap_fc_kernel, inv_hw=1.0 / float(hw))

    out = pl.pallas_call(
        kernel,
        out_shape=jax.ShapeDtypeStruct((n, k), x.dtype),
        grid_spec=pltpu.PrefetchScalarGridSpec(
            num_scalar_prefetch=0,
            grid=grid,
            in_specs=[
                # x: channel tile, full batch + full spatial extent
                pl.BlockSpec((n, c_blk, hw), lambda j, l: (0, l, 0)),
                # fc weight: (channel tile, class tile)
                pl.BlockSpec((c_blk, k_blk), lambda j, l: (l, j)),
                # fc bias: class tile
                pl.BlockSpec((1, k_blk), lambda j, l: (0, j)),
            ],
            # Output tile depends only on j -> resident accumulator across the
            # "arbitrary" channel-reduction axis.
            out_specs=pl.BlockSpec((n, k_blk), lambda j, l: (0, j)),
            scratch_shapes=[pltpu.VMEM((n, k_blk), jnp.float32)],
        ),
        compiler_params=pltpu.CompilerParams(
            # Class tiles are independent -> "parallel" (sharded across v7x's
            # 2 TensorCores, neutral on v5e/v6e). Channel reduction is last
            # and "arbitrary".
            dimension_semantics=("parallel", "arbitrary"),
        ),
    )(x3, w_t, b2)
    return out


if __name__ == "__main__":
    key = jax.random.PRNGKey(0)
    kx, kw, kb = jax.random.split(key, 3)

    # Small feature map entering the head (consistent with the module tail:
    # relu4 output -> avgpool -> fc), plus a small lane-dense classifier.
    n, c, h, w = 2, 256, 8, 8
    num_classes = 128

    x = jax.random.normal(kx, (n, c, h, w), dtype=jnp.float32)
    fc_weight = jax.random.normal(kw, (num_classes, c), dtype=jnp.float32) * 0.02
    fc_bias = jax.random.normal(kb, (num_classes,), dtype=jnp.float32)

    y = xception_head(x, fc_weight, fc_bias)
    y = jax.block_until_ready(y)

    # Reference: GlobalAveragePool2d followed by nn.Linear (PyTorch semantics).
    pooled_ref = jnp.mean(jnp.reshape(x, (n, c, -1)), axis=2)
    y_ref = pooled_ref @ fc_weight.T + fc_bias

    assert y.shape == (n, num_classes), y.shape
    assert y.dtype == x.dtype
    assert bool(jnp.allclose(y, y_ref, rtol=1e-4, atol=1e-4)), float(
        jnp.max(jnp.abs(y - y_ref))
    )

    print("KERNEL_OK")
</pallas_src>

<mosaic_0001>
module attributes {stable_mosaic.version = 11 : i64} {
  func.func @_gap_fc_kernel(%arg0: i32, %arg1: i32, %arg2: memref<2x256x64xf32, #tpu.memory_space<vmem>>, %arg3: memref<256x128xf32, #tpu.memory_space<vmem>>, %arg4: memref<1x128xf32, #tpu.memory_space<vmem>>, %arg5: memref<2x128xf32, #tpu.memory_space<vmem>>, %arg6: memref<2x128xf32, #tpu.memory_space<vmem>>) attributes {dimension_semantics = [#tpu.dimension_semantics<parallel>, #tpu.dimension_semantics<arbitrary>], iteration_bounds = array<i64: 1, 1>, scalar_prefetch = 0 : i64, scratch_operands = 1 : i64, tpu.core_type = #tpu.core_type<tc>, window_params = [{transform_indices = @transform_0, window_bounds = array<i64: 2, 256, 64>}, {transform_indices = @transform_1, window_bounds = array<i64: 256, 128>}, {transform_indices = @transform_2, window_bounds = array<i64: 1, 128>}, {transform_indices = @transform_3, window_bounds = array<i64: 2, 128>}]} {
    %c0_i32 = arith.constant 0 : i32
    %0 = arith.cmpi eq, %arg1, %c0_i32 : i32
    %1 = arith.extui %0 : i1 to i32
    %c0_i32_0 = arith.constant 0 : i32
    %2 = arith.cmpi ne, %1, %c0_i32_0 : i32
    scf.if %2 {
      %cst_13 = arith.constant 0.000000e+00 : f32
      %15 = vector.broadcast %cst_13 : f32 to vector<2x128xf32>
      %c0_14 = arith.constant 0 : index
      %c0_15 = arith.constant 0 : index
      %16 = vector.load %arg6[%c0_14, %c0_15] : memref<2x128xf32, #tpu.memory_space<vmem>>, vector<2x128xf32>
      tpu.vector_store %arg6[%c0_14, %c0_15], %15 {strides = array<i32>} : memref<2x128xf32, #tpu.memory_space<vmem>>, vector<2x128xf32>,
    } else {
    }
    %c0 = arith.constant 0 : index
    %c0_1 = arith.constant 0 : index
    %c0_2 = arith.constant 0 : index
    %3 = vector.load %arg2[%c0, %c0_1, %c0_2] : memref<2x256x64xf32, #tpu.memory_space<vmem>>, vector<2x256x64xf32>
    %cst = arith.constant dense<0.000000e+00> : vector<2x256xf32>
    %4 = vector.multi_reduction <add>, %3, %cst [2] : vector<2x256x64xf32> to vector<2x256xf32>
    %cst_3 = arith.constant 1.562500e-02 : f32
    %5 = vector.broadcast %cst_3 : f32 to vector<2x256xf32>
    %6 = arith.mulf %4, %5 : vector<2x256xf32>
    %c0_4 = arith.constant 0 : index
    %c0_5 = arith.constant 0 : index
    %7 = vector.load %arg6[%c0_4, %c0_5] : memref<2x128xf32, #tpu.memory_space<vmem>>, vector<2x128xf32>
    %c0_6 = arith.constant 0 : index
    %c0_7 = arith.constant 0 : index
    %8 = vector.load %arg3[%c0_6, %c0_7] : memref<256x128xf32, #tpu.memory_space<vmem>>, vector<256x128xf32>
    %cst_8 = arith.constant dense<0.000000e+00> : vector<2x128xf32>
    %9 = tpu.matmul %6, %8, %cst_8 {dimension_numbers = #tpu.dot_dimension_numbers<[1], [0], [0], [1], [0, 0, 1, 1], [], []>} : vector<2x256xf32>, vector<256x128xf32>, vector<2x128xf32> -> vector<2x128xf32>
    %10 = arith.addf %7, %9 : vector<2x128xf32>
    %c0_9 = arith.constant 0 : index
    %c0_10 = arith.constant 0 : index
    %11 = vector.load %arg6[%c0_9, %c0_10] : memref<2x128xf32, #tpu.memory_space<vmem>>, vector<2x128xf32>
    tpu.vector_store %arg6[%c0_9, %c0_10], %10 {strides = array<i32>} : memref<2x128xf32, #tpu.memory_space<vmem>>, vector<2x128xf32>,
    %c0_i32_11 = arith.constant 0 : i32
    %12 = arith.cmpi eq, %arg1, %c0_i32_11 : i32
    %13 = arith.extui %12 : i1 to i32
    %c0_i32_12 = arith.constant 0 : i32
    %14 = arith.cmpi ne, %13, %c0_i32_12 : i32
    scf.if %14 {
      %c0_13 = arith.constant 0 : index
      %c0_14 = arith.constant 0 : index
      %15 = vector.load %arg6[%c0_13, %c0_14] : memref<2x128xf32, #tpu.memory_space<vmem>>, vector<2x128xf32>
      %c0_15 = arith.constant 0 : index
      %c0_16 = arith.constant 0 : index
      %16 = vector.load %arg4[%c0_15, %c0_16] : memref<1x128xf32, #tpu.memory_space<vmem>>, vector<1x128xf32>
      %17 = vector.broadcast %16 : vector<1x128xf32> to vector<2x128xf32>
      %18 = arith.addf %15, %17 : vector<2x128xf32>
      %c0_17 = arith.constant 0 : index
      %c0_18 = arith.constant 0 : index
      %19 = vector.load %arg5[%c0_17, %c0_18] : memref<2x128xf32, #tpu.memory_space<vmem>>, vector<2x128xf32>
      tpu.vector_store %arg5[%c0_17, %c0_18], %18 {strides = array<i32>} : memref<2x128xf32, #tpu.memory_space<vmem>>, vector<2x128xf32>,
    } else {
    }
    return
  }
  func.func @transform_0(%arg0: i32, %arg1: i32) -> (i32, i32, i32) {
    %c0_i32 = arith.constant 0 : i32
    %c0_i32_0 = arith.constant 0 : i32
    %c0_i32_1 = arith.constant 0 : i32
    return %c0_i32, %arg1, %c0_i32_0 : i32, i32, i32
  }
  func.func @transform_1(%arg0: i32, %arg1: i32) -> (i32, i32) {
    %c0_i32 = arith.constant 0 : i32
    return %arg1, %arg0 : i32, i32
  }
  func.func @transform_2(%arg0: i32, %arg1: i32) -> (i32, i32) {
    %c0_i32 = arith.constant 0 : i32
    %c0_i32_0 = arith.constant 0 : i32
    return %c0_i32, %arg0 : i32, i32
  }
  func.func @transform_3(%arg0: i32, %arg1: i32) -> (i32, i32) {
    %c0_i32 = arith.constant 0 : i32
    %c0_i32_0 = arith.constant 0 : i32
    return %c0_i32, %arg0 : i32, i32
  }
}

</mosaic_0001>

<bundles_post_ra>
// kernel: tpu_custom_call.1
= control target key start
LH: loop header
LB: loop body
LE: loop exit
PB: predicated region body
PF: predicated region fallthrough
CT: control target
= control target key end

     0   :  { %vm84_vm0 = vcmask 523264   ;;  %s1588_s0 = inlined_call_operand.vmem [shape: f32[2,256,64], index: 0, kind: input, shape index: {}]   ;;  %s1589_s1 = inlined_call_operand.vmem [shape: f32[256,128], index: 1, kind: input, shape index: {}]   ;;  %s1590_s2 = inlined_call_operand.vmem [shape: f32[1,128], index: 2, kind: input, shape index: {}]   ;;  %s1591_s3 = inlined_call_operand.hbm [shape: f32[2,128], index: 3, kind: output, shape index: {}]  }
   0x1   :  { %v68_v0 = vld [vmem:[%s1588_s0 + $0x180] sm:$0xff]  ;;  %v69_v2 = vld [vmem:[%s1588_s0 + $0x188] sm:$0xff]  ;;  %v38_v13 = vld [vmem:[%s1588_s0 + $0x90] sm:$0xff] }
   0x2   :  { %v36_v1 = vld [vmem:[%s1588_s0 + $0x80] sm:$0xff]  ;;  %v229_v3 = vsel %vm84_vm0, %v68_v0, 0.0  ;;  %v37_v5 = vld [vmem:[%s1588_s0 + $0x88] sm:$0xff]  ;;  %v232_v6 = vsel %vm84_vm0, %v69_v2, 0.0  ;;  %v139_v15 = vsel %vm84_vm0, %v38_v13, 0.0  ;;  %v70_v16 = vld [vmem:[%s1588_s0 + $0x190] sm:$0xff] }
   0x3   :  { %v133_v4 = vsel %vm84_vm0, %v36_v1, 0.0  ;;  %230 = vadd.xlane.f32.xlu1 %v229_v3  ;;  %v136_v7 = vsel %vm84_vm0, %v37_v5, 0.0  ;;  %v21_v8 = vld [vmem:[%s1588_s0 + $0x8] sm:$0xff]  ;;  %v20_v9 = vld [vmem:[%s1588_s0] sm:$0xff]  ;;  %v235_v18 = vsel %vm84_vm0, %v70_v16, 0.0  ;;  %v39_v20 = vld [vmem:[%s1588_s0 + $0x98] sm:$0xff] }
   0x4   :  { %134 = vadd.xlane.f32.xlu0 %v133_v4  ;;  %v88_v10 = vsel %vm84_vm0, %v21_v8, 0.0  ;;  %v85_v11 = vsel %vm84_vm0, %v20_v9, 0.0  ;;  %v52_v12 = vld [vmem:[%s1588_s0 + $0x100] sm:$0xff]  ;;  %v53_v17 = vld [vmem:[%s1588_s0 + $0x108] sm:$0xff]  ;;  %v22_v21 = vld [vmem:[%s1588_s0 + $0x10] sm:$0xff]  ;;  %v142_v22 = vsel %vm84_vm0, %v39_v20, 0.0 }
   0x5   :  { %v181_v14 = vsel %vm84_vm0, %v52_v12, 0.0  ;;  %v184_v19 = vsel %vm84_vm0, %v53_v17, 0.0  ;;  %v91_v23 = vsel %vm84_vm0, %v22_v21, 0.0  ;;  %v71_v24 = vld [vmem:[%s1588_s0 + $0x198] sm:$0xff]  ;;  %v54_v25 = vld [vmem:[%s1588_s0 + $0x110] sm:$0xff] }
   0x7   :  { %233 = vadd.xlane.f32.xlu1 %v232_v6 }
   0x8   :  { %137 = vadd.xlane.f32.xlu0 %v136_v7 }
   0xb   :  { %89 = vadd.xlane.f32.xlu1 %v88_v10 }
   0xc   :  { %86 = vadd.xlane.f32.xlu0 %v85_v11 }
   0xf   :  { %182 = vadd.xlane.f32.xlu1 %v181_v14 }
  0x10   :  { %140 = vadd.xlane.f32.xlu0 %v139_v15 }
  0x13   :  { %236 = vadd.xlane.f32.xlu1 %v235_v18 }
  0x14   :  { %185 = vadd.xlane.f32.xlu0 %v184_v19 }
  0x17   :  { %143 = vadd.xlane.f32.xlu1 %v142_v22 }
  0x18   :  { %92 = vadd.xlane.f32.xlu0 %v91_v23 }
  0x19   :  { %8 = vsyncpa [#allocation4], 0  ;;  %v238_v26 = vsel %vm84_vm0, %v71_v24, 0.0  ;;  %v187_v27 = vsel %vm84_vm0, %v54_v25, 0.0  ;;  %v40_v28 = vld [vmem:[%s1588_s0 + $0xa0] sm:$0xff]  ;;  %v23_v29 = vld [vmem:[%s1588_s0 + $0x18] sm:$0xff] }
  0x1a   :  { %v145_v30 = vsel %vm84_vm0, %v40_v28, 0.0  ;;  %v94_v31 = vsel %vm84_vm0, %v23_v29, 0.0  ;;  %v72_v32 = vld [vmem:[%s1588_s0 + $0x1a0] sm:$0xff]  ;;  %v55_v33 = vld [vmem:[%s1588_s0 + $0x118] sm:$0xff]  ;;  %v41_v36 = vld [vmem:[%s1588_s0 + $0xa8] sm:$0xff]  ;;  %vm449_vm1 = vcmask 130112  }
  0x1b   :  { %239 = vadd.xlane.f32.xlu1 %v238_v26  ;;  %v241_v34 = vsel %vm84_vm0, %v72_v32, 0.0  ;;  %v190_v35 = vsel %vm84_vm0, %v55_v33, 0.0  ;;  %v24_v37 = vld [vmem:[%s1588_s0 + $0x20] sm:$0xff]  ;;  %v148_v38 = vsel %vm84_vm0, %v41_v36, 0.0  ;;  %v73_v40 = vld [vmem:[%s1588_s0 + $0x1a8] sm:$0xff]  ;;  %v42_v44 = vld [vmem:[%s1588_s0 + $0xb0] sm:$0xff] }
  0x1c   :  { %188 = vadd.xlane.f32.xlu0 %v187_v27  ;;  %v97_v39 = vsel %vm84_vm0, %v24_v37, 0.0  ;;  %v56_v41 = vld [vmem:[%s1588_s0 + $0x120] sm:$0xff]  ;;  %v244_v42 = vsel %vm84_vm0, %v73_v40, 0.0  ;;  %v25_v45 = vld [vmem:[%s1588_s0 + $0x28] sm:$0xff]  ;;  %v151_v46 = vsel %vm84_vm0, %v42_v44, 0.0  ;;  %v74_v48 = vld [vmem:[%s1588_s0 + $0x1b0] sm:$0xff] }
  0x1d   :  { %v193_v43 = vsel %vm84_vm0, %v56_v41, 0.0  ;;  %v100_v47 = vsel %vm84_vm0, %v25_v45, 0.0  ;;  %v57_v49 = vld [vmem:[%s1588_s0 + $0x128] sm:$0xff]  ;;  %v247_v50 = vsel %vm84_vm0, %v74_v48, 0.0  ;;  %v43_v52 = vld [vmem:[%s1588_s0 + $0xb8] sm:$0xff]  ;;  %v26_v53 = vld [vmem:[%s1588_s0 + $0x30] sm:$0xff] }
  0x1e   :  { %v196_v51 = vsel %vm84_vm0, %v57_v49, 0.0  ;;  %v154_v54 = vsel %vm84_vm0, %v43_v52, 0.0  ;;  %v103_v55 = vsel %vm84_vm0, %v26_v53, 0.0  ;;  %v75_v56 = vld [vmem:[%s1588_s0 + $0x1b8] sm:$0xff]  ;;  %v58_v57 = vld [vmem:[%s1588_s0 + $0x130] sm:$0xff]  ;;  %v44_v60 = vld [vmem:[%s1588_s0 + $0xc0] sm:$0xff] }
  0x1f   :  { %146 = vadd.xlane.f32.xlu1 %v145_v30  ;;  %v250_v58 = vsel %vm84_vm0, %v75_v56, 0.0  ;;  %v199_v59 = vsel %vm84_vm0, %v58_v57, 0.0  ;;  %v27_v61 = vld [vmem:[%s1588_s0 + $0x38] sm:$0xff]  ;;  %v157_v62 = vsel %vm84_vm0, %v44_v60, 0.0  ;;  %v76_v0 = vld [vmem:[%s1588_s0 + $0x1c0] sm:$0xff]  ;;  %v45_v4 = vld [vmem:[%s1588_s0 + $0xc8] sm:$0xff] }
  0x20   :  { %95 = vadd.xlane.f32.xlu0 %v94_v31  ;;  %v106_v63 = vsel %vm84_vm0, %v27_v61, 0.0  ;;  %v59_v1 = vld [vmem:[%s1588_s0 + $0x138] sm:$0xff]  ;;  %v253_v2 = vsel %vm84_vm0, %v76_v0, 0.0  ;;  %v28_v5 = vld [vmem:[%s1588_s0 + $0x40] sm:$0xff]  ;;  %v160_v6 = vsel %vm84_vm0, %v45_v4, 0.0  ;;  %v77_v8 = vld [vmem:[%s1588_s0 + $0x1c8] sm:$0xff] }
  0x21   :  { %v202_v3 = vsel %vm84_vm0, %v59_v1, 0.0  ;;  %v109_v7 = vsel %vm84_vm0, %v28_v5, 0.0  ;;  %v60_v9 = vld [vmem:[%s1588_s0 + $0x140] sm:$0xff]  ;;  %v256_v10 = vsel %vm84_vm0, %v77_v8, 0.0  ;;  %v46_v12 = vld [vmem:[%s1588_s0 + $0xd0] sm:$0xff]  ;;  %v29_v13 = vld [vmem:[%s1588_s0 + $0x48] sm:$0xff] }
  0x22   :  { %v205_v11 = vsel %vm84_vm0, %v60_v9, 0.0  ;;  %v163_v14 = vsel %vm84_vm0, %v46_v12, 0.0  ;;  %v112_v15 = vsel %vm84_vm0, %v29_v13, 0.0  ;;  %v78_v16 = vld [vmem:[%s1588_s0 + $0x1d0] sm:$0xff]  ;;  %v61_v17 = vld [vmem:[%s1588_s0 + $0x148] sm:$0xff]  ;;  %v47_v20 = vld [vmem:[%s1588_s0 + $0xd8] sm:$0xff] }
  0x23   :  { %242 = vadd.xlane.f32.xlu1 %v241_v34  ;;  %v259_v18 = vsel %vm84_vm0, %v78_v16, 0.0  ;;  %v208_v19 = vsel %vm84_vm0, %v61_v17, 0.0  ;;  %v30_v21 = vld [vmem:[%s1588_s0 + $0x50] sm:$0xff]  ;;  %v166_v22 = vsel %vm84_vm0, %v47_v20, 0.0  ;;  %v79_v24 = vld [vmem:[%s1588_s0 + $0x1d8] sm:$0xff]  ;;  %v48_v28 = vld [vmem:[%s1588_s0 + $0xe0] sm:$0xff] }
  0x24   :  { %191 = vadd.xlane.f32.xlu0 %v190_v35  ;;  %v115_v23 = vsel %vm84_vm0, %v30_v21, 0.0  ;;  %v62_v25 = vld [vmem:[%s1588_s0 + $0x150] sm:$0xff]  ;;  %v262_v26 = vsel %vm84_vm0, %v79_v24, 0.0  ;;  %v31_v29 = vld [vmem:[%s1588_s0 + $0x58] sm:$0xff]  ;;  %v169_v30 = vsel %vm84_vm0, %v48_v28, 0.0  ;;  %v80_v32 = vld [vmem:[%s1588_s0 + $0x1e0] sm:$0xff] }
  0x25   :  { %v211_v27 = vsel %vm84_vm0, %v62_v25, 0.0  ;;  %v118_v31 = vsel %vm84_vm0, %v31_v29, 0.0  ;;  %v63_v33 = vld [vmem:[%s1588_s0 + $0x158] sm:$0xff]  ;;  %v265_v34 = vsel %vm84_vm0, %v80_v32, 0.0  ;;  %v49_v36 = vld [vmem:[%s1588_s0 + $0xe8] sm:$0xff]  ;;  %v32_v37 = vld [vmem:[%s1588_s0 + $0x60] sm:$0xff] }
  0x26   :  { %v214_v35 = vsel %vm84_vm0, %v63_v33, 0.0  ;;  %v81_v40 = vld [vmem:[%s1588_s0 + $0x1e8] sm:$0xff]  ;;  %v64_v41 = vld [vmem:[%s1588_s0 + $0x160] sm:$0xff]  ;;  %v50_v44 = vld [vmem:[%s1588_s0 + $0xf0] sm:$0xff]  ;;  %vm456_vm2 = vcmask 195712   ;;  %vm463_vm3 = vcmask 261312  }
  0x27   :  { %149 = vadd.xlane.f32.xlu1 %v148_v38  ;;  %v172_v38 = vsel %vm84_vm0, %v49_v36, 0.0  ;;  %v33_v45 = vld [vmem:[%s1588_s0 + $0x68] sm:$0xff]  ;;  %v82_v48 = vld [vmem:[%s1588_s0 + $0x1f0] sm:$0xff]  ;;  %v51_v52 = vld [vmem:[%s1588_s0 + $0xf8] sm:$0xff]  ;;  %vm470_vm4 = vcmask 326912   ;;  %vm477_vm5 = vcmask 392512  }
  0x28   :  { %98 = vadd.xlane.f32.xlu0 %v97_v39  ;;  %v121_v39 = vsel %vm84_vm0, %v32_v37, 0.0  ;;  %v65_v49 = vld [vmem:[%s1588_s0 + $0x168] sm:$0xff]  ;;  %v358_v53 = vld [vmem:[%s1589_s1 + $0x80] sm:$0xff]  ;;  %v178_v60 = vsel %vm84_vm0, %v51_v52, 0.0  ;;  %v361_v0 = vld [vmem:[%s1589_s1 + $0x98] sm:$0xff]  ;;  %vm484_vm6 = vcmask 458112  }
  0x29   :  { %v342_v57 = vld [vmem:[%s1589_s1] sm:$0xff]  ;;  %v66_v1 = vld [vmem:[%s1588_s0 + $0x170] sm:$0xff]  ;;  %v345_v4 = vld [vmem:[%s1589_s1 + $0x18] sm:$0xff]  ;;  %vm491_vm7 = vcmask 523712   ;;  %vm498_vm8 = vcmask 589312   ;;  %vm505_vm9 = vcmask 654912  }
  0x2a   :  { %v67_v8 = vld [vmem:[%s1588_s0 + $0x178] sm:$0xff]  ;;  %v362_v9 = vld [vmem:[%s1589_s1 + $0xa0] sm:$0xff]  ;;  %v348_v21 = vld [vmem:[%s1589_s1 + $0x30] sm:$0xff]  ;;  %vm512_vm10 = vcmask 720512   ;;  %vm519_vm11 = vcmask 786112   ;;  %vm526_vm12 = vcmask 851712  }
  0x2b   :  { %245 = vadd.xlane.f32.xlu1 %v244_v42  ;;  %v268_v42 = vsel %vm84_vm0, %v81_v40, 0.0  ;;  %v346_v13 = vld [vmem:[%s1589_s1 + $0x20] sm:$0xff]  ;;  %v226_v16 = vsel %vm84_vm0, %v67_v8, 0.0  ;;  %v367_v25 = vld [vmem:[%s1589_s1 + $0xc8] sm:$0xff]  ;;  %v352_v33 = vld [vmem:[%s1589_s1 + $0x50] sm:$0xff]  ;;  %vm533_vm13 = vcmask 917312  }
  0x2c   :  { %194 = vadd.xlane.f32.xlu0 %v193_v43  ;;  %v217_v43 = vsel %vm84_vm0, %v64_v41, 0.0  ;;  %v366_v24 = vld [vmem:[%s1589_s1 + $0xc0] sm:$0xff]  ;;  %v351_v28 = vld [vmem:[%s1589_s1 + $0x48] sm:$0xff]  ;;  %vm540_vm14 = vcmask 982912   ;;  %vm547_vm15 = vcmask 1048512   ;;  %s985_s14 = smov [#allocation3]  }
  0x2d   :  { %v370_v36 = vld [vmem:[%s1589_s1 + $0xe0] sm:$0xff]  ;;  %v371_v37 = vld [vmem:[%s1589_s1 + $0xe8] sm:$0xff]  ;;  %s882_s15 = sshll.u32 %s985_s14, 4  ;;  %s883_s15 = int_to_ptr.vmem [resolvable:$true] %s882_s15 }
  0x2e   :  { %v354_v40 = vld [vmem:[%s1589_s1 + $0x60] sm:$0xff]  ;;  %v355_v41 = vld [vmem:[%s1589_s1 + $0x68] sm:$0xff]  ;;  %s960_s16 = scalar_lea.vmem %s883_s15, 32  ;;  %p965_p1 = scmp.lt.s32.totalorder %s883_s15, %s883_s15 }
  0x2f   :  { %152 = vadd.xlane.f32.xlu1 %v151_v46  ;;  %v175_v46 = vsel %vm84_vm0, %v50_v44, 0.0  ;;  %v373_v44 = vld [vmem:[%s1589_s1 + $0xf8] sm:$0xff]  ;;  %p961_p0 = scmp.ne.s32.totalorder %s883_s15, %s960_s16  ;;  %p966_p2 = scmp.lt.s32.totalorder %s960_s16, %s960_s16 }
  0x30   :  { %101 = vadd.xlane.f32.xlu0 %v100_v47  ;;  %v124_v47 = vsel %vm84_vm0, %v33_v45, 0.0 }
  0x31   :  { %p967_p3 = por %p966_p2, %p965_p1 }
  0x33   :  { %248 = vadd.xlane.f32.xlu1 %v247_v50  ;;  %v271_v50 = vsel %vm84_vm0, %v82_v48, 0.0  ;;  %v357_v48 = vld [vmem:[%s1589_s1 + $0x78] sm:$0xff]  ;;  %p968_p4 = pnand %p967_p3, %p961_p0 }
  0x34   :  { %197 = vadd.xlane.f32.xlu0 %v196_v51  ;;  %v220_v51 = vsel %vm84_vm0, %v65_v49, 0.0 }
  0x37   :  { %155 = vadd.xlane.f32.xlu1 %v154_v54  ;;  %v359_v54 = vld [vmem:[%s1589_s1 + $0x88] sm:$0xff] }
  0x38   :  { %104 = vadd.xlane.f32.xlu0 %v103_v55  ;;  %v34_v55 = vld [vmem:[%s1588_s0 + $0x70] sm:$0xff]  ;;  %v926_v56 = vpack.c.bf16 %v359_v54, %v358_v53 }
  0x39   :  { %v127_v61 = vsel %vm84_vm0, %v34_v55, 0.0 }
  0x3a   :  { %927 = vmatprep.subr.bf16.mxu0 %v926_v56 }
  0x3b   :  { %251 = vadd.xlane.f32.xlu1 %v250_v58  ;;  %v343_v58 = vld [vmem:[%s1589_s1 + $0x8] sm:$0xff] }
  0x3c   :  { %200 = vadd.xlane.f32.xlu0 %v199_v59  ;;  %v928_v59 = vpack.c.bf16 %v343_v58, %v342_v57 }
  0x3e   :  { %929 = vmatpush3.bf16.msra.mxu0 %v928_v59 }
  0x3f   :  { %158 = vadd.xlane.f32.xlu1 %v157_v62  ;;  %v83_v62 = vld [vmem:[%s1588_s0 + $0x1f8] sm:$0xff] }
  0x40   :  { %107 = vadd.xlane.f32.xlu0 %v106_v63  ;;  %v360_v63 = vld [vmem:[%s1589_s1 + $0x90] sm:$0xff] }
  0x43   :  { %254 = vadd.xlane.f32.xlu1 %v253_v2  ;;  %v930_v2 = vpack.c.bf16 %v361_v0, %v360_v63 }
  0x44   :  { %203 = vadd.xlane.f32.xlu0 %v202_v3  ;;  %v344_v3 = vld [vmem:[%s1589_s1 + $0x10] sm:$0xff] }
  0x45   :  { %v932_v5 = vpack.c.bf16 %v345_v4, %v344_v3  ;;  %931 = vmatprep.subr.bf16.mxu0 %v930_v2 }
  0x47   :  { %161 = vadd.xlane.f32.xlu1 %v160_v6  ;;  %v274_v6 = vsel %vm84_vm0, %v83_v62, 0.0  ;;  %933 = vmatpush3.bf16.msra.mxu0 %v932_v5 }
  0x48   :  { %110 = vadd.xlane.f32.xlu0 %v109_v7  ;;  %v223_v7 = vsel %vm84_vm0, %v66_v1, 0.0 }
  0x4b   :  { %257 = vadd.xlane.f32.xlu1 %v256_v10  ;;  %v363_v10 = vld [vmem:[%s1589_s1 + $0xa8] sm:$0xff] }
  0x4c   :  { %206 = vadd.xlane.f32.xlu0 %v205_v11  ;;  %v35_v11 = vld [vmem:[%s1588_s0 + $0x78] sm:$0xff]  ;;  %v934_v12 = vpack.c.bf16 %v363_v10, %v362_v9 }
  0x4d   :  { %v130_v17 = vsel %vm84_vm0, %v35_v11, 0.0  ;;  %vm786_vm0 = vcmask 1041409  }
  0x4e   :  { %935 = vmatprep.subr.bf16.mxu0 %v934_v12 }
  0x4f   :  { %164 = vadd.xlane.f32.xlu1 %v163_v14  ;;  %v347_v14 = vld [vmem:[%s1589_s1 + $0x28] sm:$0xff] }
  0x50   :  { %113 = vadd.xlane.f32.xlu0 %v112_v15  ;;  %v936_v15 = vpack.c.bf16 %v347_v14, %v346_v13 }
  0x52   :  { %937 = vmatpush3.bf16.msra.mxu0 %v936_v15 }
  0x53   :  { %260 = vadd.xlane.f32.xlu1 %v259_v18  ;;  %v364_v18 = vld [vmem:[%s1589_s1 + $0xb0] sm:$0xff] }
  0x54   :  { %209 = vadd.xlane.f32.xlu0 %v208_v19  ;;  %v365_v19 = vld [vmem:[%s1589_s1 + $0xb8] sm:$0xff] }
  0x55   :  { %v938_v20 = vpack.c.bf16 %v365_v19, %v364_v18 }
  0x57   :  { %167 = vadd.xlane.f32.xlu1 %v166_v22  ;;  %v349_v22 = vld [vmem:[%s1589_s1 + $0x38] sm:$0xff]  ;;  %939 = vmatprep.subr.bf16.mxu0 %v938_v20 }
  0x58   :  { %116 = vadd.xlane.f32.xlu0 %v115_v23  ;;  %v940_v23 = vpack.c.bf16 %v349_v22, %v348_v21 }
  0x5a   :  { %941 = vmatpush3.bf16.msra.mxu0 %v940_v23 }
  0x5b   :  { %263 = vadd.xlane.f32.xlu1 %v262_v26  ;;  %v942_v26 = vpack.c.bf16 %v367_v25, %v366_v24 }
  0x5c   :  { %212 = vadd.xlane.f32.xlu0 %v211_v27  ;;  %v350_v27 = vld [vmem:[%s1589_s1 + $0x40] sm:$0xff] }
  0x5d   :  { %v944_v29 = vpack.c.bf16 %v351_v28, %v350_v27  ;;  %943 = vmatprep.subr.bf16.mxu0 %v942_v26 }
  0x5f   :  { %170 = vadd.xlane.f32.xlu1 %v169_v30  ;;  %v368_v30 = vld [vmem:[%s1589_s1 + $0xd0] sm:$0xff]  ;;  %945 = vmatpush3.bf16.msra.mxu0 %v944_v29 }
  0x60   :  { %119 = vadd.xlane.f32.xlu0 %v118_v31  ;;  %v369_v31 = vld [vmem:[%s1589_s1 + $0xd8] sm:$0xff] }
  0x61   :  { %v946_v32 = vpack.c.bf16 %v369_v31, %v368_v30 }
  0x63   :  { %266 = vadd.xlane.f32.xlu1 %v265_v34  ;;  %v353_v34 = vld [vmem:[%s1589_s1 + $0x58] sm:$0xff]  ;;  %947 = vmatprep.subr.bf16.mxu0 %v946_v32 }
  0x64   :  { %215 = vadd.xlane.f32.xlu0 %v214_v35  ;;  %v948_v35 = vpack.c.bf16 %v353_v34, %v352_v33 }
  0x66   :  { %949 = vmatpush3.bf16.msra.mxu0 %v948_v35 }
  0x67   :  { %173 = vadd.xlane.f32.xlu1 %v172_v38  ;;  %v438_v38 = vlaneseq }
  0x68   :  { %122 = vadd.xlane.f32.xlu0 %v121_v39  ;;  %v950_v39 = vpack.c.bf16 %v371_v37, %v370_v36 }
  0x69   :  { %v1352_v45 = vand.u32 127, %v438_v38 }
  0x6a   :  { %951 = vmatprep.subr.bf16.mxu0 %v950_v39 }
  0x6b   :  { %269 = vadd.xlane.f32.xlu1 %v268_v42  ;;  %v952_v42 = vpack.c.bf16 %v355_v41, %v354_v40  ;;  %v451_v62 = vadd.s32 4294967280, %v1352_v45  ;;  %v458_v18 = vadd.s32 4294967272, %v1352_v45  ;;  %v465_v36 = vadd.s32 4294967264, %v1352_v45 }
  0x6c   :  { %218 = vadd.xlane.f32.xlu0 %v217_v43  ;;  %v372_v43 = vld [vmem:[%s1589_s1 + $0xf0] sm:$0xff] }
  0x6d   :  { %953 = vmatpush3.bf16.msra.mxu0 %v952_v42 }
  0x6f   :  { %176 = vadd.xlane.f32.xlu1 %v175_v46  ;;  %v954_v46 = vpack.c.bf16 %v373_v44, %v372_v43 }
  0x70   :  { %125 = vadd.xlane.f32.xlu0 %v124_v47  ;;  %v356_v47 = vld [vmem:[%s1589_s1 + $0x70] sm:$0xff] }
  0x71   :  { %v956_v49 = vpack.c.bf16 %v357_v48, %v356_v47  ;;  %955 = vmatprep.subr.bf16.mxu0 %v954_v46 }
  0x73   :  { %272 = vadd.xlane.f32.xlu1 %v271_v50  ;;  %v1360_v50 = vshrl.u32 %v438_v38, 7  ;;  %957 = vmatpush3.bf16.msra.mxu0 %v956_v49 }
  0x74   :  { %221 = vadd.xlane.f32.xlu0 %v220_v51  ;;  %v444_v51 = vadd.s32 4294967288, %v1352_v45 }
  0x75   :  { %v442_v54 = vsub.s32 %v1352_v45, %v1360_v50  ;;  %v454_v11 = vsub.s32 %v451_v62, %v1360_v50  ;;  %v461_v27 = vsub.s32 %v458_v18, %v1360_v50  ;;  %v468_v46 = vsub.s32 %v465_v36, %v1360_v50 }
  0x76   :  { %v447_v57 = vsub.s32 %v444_v51, %v1360_v50 }
  0x77   :  { %179 = vadd.xlane.f32.xlu1 %v178_v60 }
  0x78   :  { %128 = vadd.xlane.f32.xlu0 %v127_v61 }
  0x7b   :  { %275 = vadd.xlane.f32.xlu1 %v274_v6 }
  0x7c   :  { %224 = vadd.xlane.f32.xlu0 %v223_v7 }
  0x7f   :  { %227 = vadd.xlane.f32.xlu1 %v226_v16 }
  0x80   :  { %131 = vadd.xlane.f32.xlu0 %v130_v17 }
  0x90   :  { %v231_v52 = vpop.xlane.xlu1 %230 }
  0x91   :  { %v135_v53 = vpop.xlane.xlu0 %134  ;;  %v325_v55 = vmul.f32 0.015625, %v231_v52 }
  0x92   :  { %v293_v56 = vmul.f32 0.015625, %v135_v53 }
  0x93   :  { %v710_v63 = vrot.slane %v325_v55, %v442_v54 }
  0x94   :  { %v234_v58 = vpop.xlane.xlu1 %233  ;;  %v552_v0 = vrot.slane %v293_v56, %v442_v54  ;;  %v472_v56 = vadd.s32 4294967256, %v1352_v45 }
  0x95   :  { %v138_v59 = vpop.xlane.xlu0 %137  ;;  %v326_v60 = vmul.f32 0.015625, %v234_v58 }
  0x96   :  { %v294_v61 = vmul.f32 0.015625, %v138_v59 }
  0x97   :  { %v714_v1 = vrot.slane %v326_v60, %v447_v57 }
  0x98   :  { %v556_v2 = vrot.slane %v294_v61, %v447_v57  ;;  %v90_v3 = vpop.xlane.xlu1 %89 }
  0x99   :  { %v87_v4 = vpop.xlane.xlu0 %86  ;;  %v715_v5 = vsel %vm449_vm1, %v714_v1, %v710_v63  ;;  %v278_v7 = vmul.f32 0.015625, %v90_v3  ;;  %v475_v1 = vsub.s32 %v472_v56, %v1360_v50 }
  0x9a   :  { %v557_v6 = vsel %vm449_vm1, %v556_v2, %v552_v0  ;;  %v277_v8 = vmul.f32 0.015625, %v87_v4 }
  0x9b   :  { %v448_v9 = vrot.slane %v278_v7, %v447_v57 }
  0x9c   :  { %v443_v10 = vrot.slane %v277_v8, %v442_v54  ;;  %v183_v12 = vpop.xlane.xlu1 %182 }
  0x9d   :  { %v141_v13 = vpop.xlane.xlu0 %140  ;;  %v309_v16 = vmul.f32 0.015625, %v183_v12 }
  0x9e   :  { %v450_v14 = vsel %vm449_vm1, %v448_v9, %v443_v10  ;;  %v295_v15 = vmul.f32 0.015625, %v141_v13  ;;  %v479_v10 = vadd.s32 4294967248, %v1352_v45 }
  0x9f   :  { %v631_v24 = vrot.slane %v309_v16, %v442_v54 }
  0xa0   :  { %v561_v17 = vrot.slane %v295_v15, %v454_v11  ;;  %v237_v19 = vpop.xlane.xlu1 %236 }
  0xa1   :  { %v186_v20 = vpop.xlane.xlu0 %185  ;;  %v327_v22 = vmul.f32 0.015625, %v237_v19  ;;  %v1392_v19 = vsub.s32 %v479_v10, %v1360_v50  ;;  %v528_v10 = vadd.s32 4294967192, %v1352_v45 }
  0xa2   :  { %v562_v21 = vsel %vm456_vm2, %v561_v17, %v557_v6  ;;  %v310_v23 = vmul.f32 0.015625, %v186_v20 }
  0xa3   :  { %v719_v25 = vrot.slane %v327_v22, %v454_v11 }
  0xa4   :  { %v635_v26 = vrot.slane %v310_v23, %v447_v57  ;;  %v144_v28 = vpop.xlane.xlu1 %143 }
  0xa5   :  { %v93_v29 = vpop.xlane.xlu0 %92  ;;  %v720_v30 = vsel %vm456_vm2, %v719_v25, %v715_v5  ;;  %v296_v32 = vmul.f32 0.015625, %v144_v28 }
  0xa6   :  { %v636_v31 = vsel %vm449_vm1, %v635_v26, %v631_v24  ;;  %v279_v33 = vmul.f32 0.015625, %v93_v29 }
  0xa7   :  { %v566_v34 = vrot.slane %v296_v32, %v461_v27 }
  0xa8   :  { %v455_v35 = vrot.slane %v279_v33, %v454_v11  ;;  %v240_v37 = vpop.xlane.xlu1 %239 }
  0xa9   :  { %v189_v38 = vpop.xlane.xlu0 %188  ;;  %v567_v39 = vsel %vm463_vm3, %v566_v34, %v562_v21  ;;  %v328_v41 = vmul.f32 0.015625, %v240_v37 }
  0xaa   :  { %v457_v40 = vsel %vm456_vm2, %v455_v35, %v450_v14  ;;  %v311_v42 = vmul.f32 0.015625, %v189_v38 }
  0xab   :  { %v724_v43 = vrot.slane %v328_v41, %v461_v27 }
  0xac   :  { %v640_v44 = vrot.slane %v311_v42, %v454_v11  ;;  %v147_v47 = vpop.xlane.xlu1 %146 }
  0xad   :  { %v96_v48 = vpop.xlane.xlu0 %95  ;;  %v725_v49 = vsel %vm463_vm3, %v724_v43, %v720_v30  ;;  %v297_v52 = vmul.f32 0.015625, %v147_v47 }
  0xae   :  { %v641_v51 = vsel %vm456_vm2, %v640_v44, %v636_v31  ;;  %v280_v53 = vmul.f32 0.015625, %v96_v48 }
  0xaf   :  { %v571_v54 = vrot.slane %v297_v52, %v468_v46 }
  0xb0   :  { %v462_v55 = vrot.slane %v280_v53, %v461_v27  ;;  %v243_v57 = vpop.xlane.xlu1 %242 }
  0xb1   :  { %v192_v58 = vpop.xlane.xlu0 %191  ;;  %v572_v59 = vsel %vm470_vm4, %v571_v54, %v567_v39  ;;  %v329_v61 = vmul.f32 0.015625, %v243_v57  ;;  %v486_v57 = vadd.s32 4294967240, %v1352_v45 }
  0xb2   :  { %v464_v60 = vsel %vm463_vm3, %v462_v55, %v457_v40  ;;  %v312_v62 = vmul.f32 0.015625, %v192_v58 }
  0xb3   :  { %v729_v63 = vrot.slane %v329_v61, %v468_v46  ;;  %v500_v61 = vadd.s32 4294967224, %v1352_v45 }
  0xb4   :  { %v645_v0 = vrot.slane %v312_v62, %v461_v27  ;;  %v150_v2 = vpop.xlane.xlu1 %149 }
  0xb5   :  { %v99_v3 = vpop.xlane.xlu0 %98  ;;  %v730_v4 = vsel %vm470_vm4, %v729_v63, %v725_v49  ;;  %v298_v6 = vmul.f32 0.015625, %v150_v2  ;;  %v1432_v63 = vsub.s32 %v486_v57, %v1360_v50 }
  0xb6   :  { %v646_v5 = vsel %vm463_vm3, %v645_v0, %v641_v51  ;;  %v281_v7 = vmul.f32 0.015625, %v99_v3  ;;  %v514_v3 = vadd.s32 4294967208, %v1352_v45 }
  0xb7   :  { %v576_v8 = vrot.slane %v298_v6, %v475_v1 }
  0xb8   :  { %v469_v9 = vrot.slane %v281_v7, %v468_v46  ;;  %v246_v11 = vpop.xlane.xlu1 %245 }
  0xb9   :  { %v195_v12 = vpop.xlane.xlu0 %194  ;;  %v577_v13 = vsel %vm477_vm5, %v576_v8, %v572_v59  ;;  %v330_v15 = vmul.f32 0.015625, %v246_v11  ;;  %v1446_v11 = vsub.s32 %v500_v61, %v1360_v50 }
  0xba   :  { %v471_v14 = vsel %vm470_vm4, %v469_v9, %v464_v60  ;;  %v313_v16 = vmul.f32 0.015625, %v195_v12  ;;  %v493_v60 = vadd.s32 4294967232, %v1352_v45  ;;  %v535_v12 = vadd.s32 4294967184, %v1352_v45 }
  0xbb   :  { %v734_v17 = vrot.slane %v330_v15, %v475_v1 }
  0xbc   :  { %v650_v18 = vrot.slane %v313_v16, %v468_v46  ;;  %v153_v20 = vpop.xlane.xlu1 %152  ;;  %v1442_v9 = vsub.s32 %v493_v60, %v1360_v50 }
  0xbd   :  { %v102_v21 = vpop.xlane.xlu0 %101  ;;  %v1395_v22 = vsel %vm477_vm5, %v734_v17, %v730_v4  ;;  %v299_v24 = vmul.f32 0.015625, %v153_v20  ;;  %v521_v4 = vadd.s32 4294967200, %v1352_v45 }
  0xbe   :  { %v651_v23 = vsel %vm470_vm4, %v650_v18, %v646_v5  ;;  %v282_v25 = vmul.f32 0.015625, %v102_v21  ;;  %v1457_v21 = vsub.s32 %v514_v3, %v1360_v50 }
  0xbf   :  { %v581_v26 = vrot.slane %v299_v24, %v1392_v19 }
  0xc0   :  { %v476_v27 = vrot.slane %v282_v25, %v475_v1  ;;  %v249_v28 = vpop.xlane.xlu1 %248 }
  0xc1   :  { %v198_v29 = vpop.xlane.xlu0 %197  ;;  %v1400_v30 = vsel %vm484_vm6, %v581_v26, %v577_v13  ;;  %v331_v62 = vmul.f32 0.015625, %v249_v28  ;;  %v542_v13 = vadd.s32 4294967176, %v1352_v45  ;;  %v1469_v28 = vsub.s32 %v528_v10, %v1360_v50 }
  0xc2   :  { %v1403_v31 = vsel %vm477_vm5, %v476_v27, %v471_v14  ;;  %v314_v32 = vmul.f32 0.015625, %v198_v29 }
  0xc3   :  { %v739_v14 = vrot.slane %v331_v62, %v1392_v19 }
  0xc4   :  { %v655_v33 = vrot.slane %v314_v32, %v475_v1  ;;  %v156_v34 = vpop.xlane.xlu1 %155  ;;  %v507_v1 = vadd.s32 4294967216, %v1352_v45 }
  0xc5   :  { %v105_v35 = vpop.xlane.xlu0 %104  ;;  %v300_v0 = vmul.f32 0.015625, %v156_v34  ;;  %v1475_v34 = vsub.s32 %v542_v13, %v1360_v50 }
  0xc6   :  { %v1406_v36 = vsel %vm477_vm5, %v655_v33, %v651_v23  ;;  %v283_v2 = vmul.f32 0.015625, %v105_v35  ;;  %v1453_v17 = vsub.s32 %v507_v1, %v1360_v50  ;;  %v1460_v23 = vsub.s32 %v521_v4, %v1360_v50 }
  0xc7   :  { %v586_v15 = vrot.slane %v300_v0, %v1432_v63  ;;  %v1472_v33 = vsub.s32 %v535_v12, %v1360_v50  ;;  %v740_v35 = vsel %vm484_vm6, %v739_v14, %v1395_v22 }
  0xc8   :  { %v252_v37 = vpop.xlane.xlu1 %251  ;;  %v483_v18 = vrot.slane %v283_v2, %v1392_v19 }
  0xc9   :  { %v201_v38 = vpop.xlane.xlu0 %200  ;;  %v332_v7 = vmul.f32 0.015625, %v252_v37  ;;  %v587_v37 = vsel %vm491_vm7, %v586_v15, %v1400_v30 }
  0xca   :  { %v315_v8 = vmul.f32 0.015625, %v201_v38 }
  0xcb   :  { %v744_v25 = vrot.slane %v332_v7, %v1432_v63 }
  0xcc   :  { %v159_v39 = vpop.xlane.xlu1 %158  ;;  %v660_v26 = vrot.slane %v315_v8, %v1392_v19 }
  0xcd   :  { %v108_v40 = vpop.xlane.xlu0 %107  ;;  %v301_v16 = vmul.f32 0.015625, %v159_v39  ;;  %v485_v39 = vsel %vm484_vm6, %v483_v18, %v1403_v31  ;;  %v745_v57 = vsel %vm491_vm7, %v744_v25, %v740_v35 }
  0xce   :  { %v284_v20 = vmul.f32 0.015625, %v108_v40  ;;  %v661_v22 = vsel %vm484_vm6, %v660_v26, %v1406_v36 }
  0xcf   :  { %v591_v19 = vrot.slane %v301_v16, %v1442_v9 }
  0xd0   :  { %v255_v41 = vpop.xlane.xlu1 %254  ;;  %v490_v40 = vrot.slane %v284_v20, %v1432_v63 }
  0xd1   :  { %v204_v42 = vpop.xlane.xlu0 %203  ;;  %v333_v27 = vmul.f32 0.015625, %v255_v41  ;;  %v592_v61 = vsel %vm498_vm8, %v591_v19, %v587_v37 }
  0xd2   :  { %v316_v29 = vmul.f32 0.015625, %v204_v42  ;;  %v492_v1 = vsel %vm491_vm7, %v490_v40, %v485_v39 }
  0xd3   :  { %v749_v30 = vrot.slane %v333_v27, %v1442_v9 }
  0xd4   :  { %v162_v43 = vpop.xlane.xlu1 %161  ;;  %v665_v60 = vrot.slane %v316_v29, %v1432_v63 }
  0xd5   :  { %v111_v44 = vpop.xlane.xlu0 %110  ;;  %v302_v32 = vmul.f32 0.015625, %v162_v43 }
  0xd6   :  { %v285_v38 = vmul.f32 0.015625, %v111_v44 }
  0xd7   :  { %v596_v31 = vrot.slane %v302_v32, %v1446_v11 }
  0xd8   :  { %v258_v46 = vpop.xlane.xlu1 %257  ;;  %v497_v62 = vrot.slane %v285_v38, %v1442_v9 }
  0xd9   :  { %v207_v47 = vpop.xlane.xlu0 %206  ;;  %v334_v41 = vmul.f32 0.015625, %v258_v46  ;;  %v597_v8 = vsel %vm505_vm9, %v596_v31, %v592_v61 }
  0xda   :  { %v317_v42 = vmul.f32 0.015625, %v207_v47 }
  0xdc   :  { %v1408_v48 = vpop.xlane.xlu1 %164  ;;  %v670_v63 = vrot.slane %v317_v42, %v1442_v9 }
  0xdd   :  { %v1410_v49 = vpop.xlane.xlu0 %113  ;;  %v303_v44 = vmul.f32 0.015625, %v1408_v48  ;;  %v754_v48 = vrot.slane %v334_v41, %v1446_v11 }
  0xde   :  { %v286_v46 = vmul.f32 0.015625, %v1410_v49 }
  0xdf   :  { %v601_v4 = vrot.slane %v303_v44, %v1453_v17 }
  0xe0   :  { %v1412_v51 = vpop.xlane.xlu1 %260  ;;  %v504_v10 = vrot.slane %v286_v46, %v1446_v11 }
  0xe1   :  { %v1414_v52 = vpop.xlane.xlu0 %209  ;;  %v335_v47 = vmul.f32 0.015625, %v1412_v51  ;;  %v750_v51 = vsel %vm498_vm8, %v749_v30, %v745_v57  ;;  %v602_v25 = vsel %vm512_vm10, %v601_v4, %v597_v8 }
  0xe2   :  { %v318_v0 = vmul.f32 0.015625, %v1414_v52 }
  0xe3   :  { %v759_v9 = vrot.slane %v335_v47, %v1453_v17 }
  0xe4   :  { %v1416_v53 = vpop.xlane.xlu1 %167  ;;  %v675_v12 = vrot.slane %v318_v0, %v1446_v11 }
  0xe5   :  { %v1418_v54 = vpop.xlane.xlu0 %116  ;;  %v304_v36 = vmul.f32 0.015625, %v1416_v53  ;;  %v666_v53 = vsel %vm491_vm7, %v665_v60, %v661_v22 }
  0xe6   :  { %v287_v2 = vmul.f32 0.015625, %v1418_v54  ;;  %v499_v54 = vsel %vm498_vm8, %v497_v62, %v492_v1 }
  0xe7   :  { %v606_v13 = vrot.slane %v304_v36, %v1457_v21 }
  0xe8   :  { %v1420_v55 = vpop.xlane.xlu1 %263  ;;  %v511_v15 = vrot.slane %v287_v2, %v1453_v17 }
  0xe9   :  { %v1422_v56 = vpop.xlane.xlu0 %212  ;;  %v336_v7 = vmul.f32 0.015625, %v1420_v55  ;;  %v755_v55 = vsel %vm505_vm9, %v754_v48, %v750_v51  ;;  %v607_v37 = vsel %vm519_vm11, %v606_v13, %v602_v25 }
  0xea   :  { %v319_v52 = vmul.f32 0.015625, %v1422_v56  ;;  %v671_v56 = vsel %vm498_vm8, %v670_v63, %v666_v53  ;;  %v760_v29 = vsel %vm512_vm10, %v759_v9, %v755_v55 }
  0xeb   :  { %v764_v26 = vrot.slane %v336_v7, %v1457_v21 }
  0xec   :  { %v1425_v58 = vpop.xlane.xlu1 %170  ;;  %v680_v11 = vrot.slane %v319_v52, %v1453_v17 }
  0xed   :  { %v1427_v59 = vpop.xlane.xlu0 %119  ;;  %v305_v14 = vmul.f32 0.015625, %v1425_v58  ;;  %v506_v58 = vsel %vm505_vm9, %v504_v10, %v499_v54 }
  0xee   :  { %v288_v16 = vmul.f32 0.015625, %v1427_v59  ;;  %v676_v59 = vsel %vm505_vm9, %v675_v12, %v671_v56 }
  0xef   :  { %v611_v19 = vrot.slane %v305_v14, %v1460_v23 }
  0xf0   :  { %v1437_v5 = vpop.xlane.xlu1 %266  ;;  %v518_v17 = vrot.slane %v288_v16, %v1457_v21 }
  0xf1   :  { %v1439_v6 = vpop.xlane.xlu0 %215  ;;  %v337_v27 = vmul.f32 0.015625, %v1437_v5  ;;  %v513_v5 = vsel %vm512_vm10, %v511_v15, %v506_v58  ;;  %v612_v31 = vsel %vm526_vm12, %v611_v19, %v607_v37 }
  0xf2   :  { %v320_v32 = vmul.f32 0.015625, %v1439_v6  ;;  %v765_v6 = vsel %vm519_vm11, %v764_v26, %v760_v29  ;;  %v520_v62 = vsel %vm519_vm11, %v518_v17, %v513_v5 }
  0xf3   :  { %v769_v57 = vrot.slane %v337_v27, %v1460_v23 }
  0xf4   :  { %v1462_v24 = vpop.xlane.xlu1 %173  ;;  %v685_v30 = vrot.slane %v320_v32, %v1457_v21 }
  0xf5   :  { %v1464_v45 = vpop.xlane.xlu0 %122  ;;  %v306_v35 = vmul.f32 0.015625, %v1462_v24  ;;  %v681_v24 = vsel %vm512_vm10, %v680_v11, %v676_v59  ;;  %v770_v63 = vsel %vm526_vm12, %v769_v57, %v765_v6 }
  0xf6   :  { %v289_v44 = vmul.f32 0.015625, %v1464_v45 }
  0xf8   :  { %v270_v43 = vpop.xlane.xlu1 %269 }
  0xf9   :  { %v1485_v50 = vpop.xlane.xlu0 %218  ;;  %v338_v38 = vmul.f32 0.015625, %v270_v43  ;;  %v616_v43 = vrot.slane %v306_v35, %v1469_v28  ;;  %v984_v35 = vmov 0.0  }
  0xfa   :  { %v321_v60 = vmul.f32 0.015625, %v1485_v50  ;;  %19 = vst [vmem:[#allocation2] sm:$0x3] %v984_v35 }
  0xfb   :  { %v774_v46 = vrot.slane %v338_v38, %v1469_v28  ;;  %v617_v4 = vsel %vm533_vm13, %v616_v43, %v612_v31 }
  0xfc   :  { %v177_v49 = vpop.xlane.xlu1 %176  ;;  %v690_v51 = vrot.slane %v321_v60, %v1460_v23 }
  0xfd   :  { %v126_v3 = vpop.xlane.xlu0 %125  ;;  %v307_v39 = vmul.f32 0.015625, %v177_v49  ;;  %v686_v49 = vsel %vm519_vm11, %v685_v30, %v681_v24  ;;  %v775_v8 = vsel %vm533_vm13, %v774_v46, %v770_v63 }
  0xfe   :  { %v290_v47 = vmul.f32 0.015625, %v126_v3  ;;  %v525_v3 = vrot.slane %v289_v44, %v1460_v23  ;;  %v691_v16 = vsel %vm526_vm12, %v690_v51, %v686_v49 }
  0xff   :  { %v621_v0 = vrot.slane %v307_v39, %v1472_v33 }
 0x100   :  { %v273_v18 = vpop.xlane.xlu1 %272  ;;  %v532_v7 = vrot.slane %v290_v47, %v1469_v28  ;;  %v527_v15 = vsel %vm526_vm12, %v525_v3, %v520_v62 }
 0x101   :  { %v222_v20 = vpop.xlane.xlu0 %221  ;;  %v339_v40 = vmul.f32 0.015625, %v273_v18  ;;  %v622_v13 = vsel %vm540_vm14, %v621_v0, %v617_v4  ;;  %v341_v37 = vld [vmem:[#allocation2] sm:$0x3] }
 0x102   :  { %v322_v61 = vmul.f32 0.015625, %v222_v20 }
 0x103   :  { %v779_v36 = vrot.slane %v339_v40, %v1472_v33 }
 0x104   :  { %v180_v41 = vpop.xlane.xlu1 %179  ;;  %v695_v52 = vrot.slane %v322_v61, %v1469_v28 }
 0x105   :  { %v129_v42 = vpop.xlane.xlu0 %128  ;;  %v308_v22 = vmul.f32 0.015625, %v180_v41  ;;  %v780_v23 = vsel %vm540_vm14, %v779_v36, %v775_v8 }
 0x106   :  { %v291_v1 = vmul.f32 0.015625, %v129_v42  ;;  %v696_v20 = vsel %vm533_vm13, %v695_v52, %v691_v16 }
 0x107   :  { %v626_v45 = vrot.slane %v308_v22, %v1475_v34 }
 0x108   :  { %v276_v21 = vpop.xlane.xlu1 %275  ;;  %v539_v10 = vrot.slane %v291_v1, %v1472_v33 }
 0x109   :  { %v225_v48 = vpop.xlane.xlu0 %224  ;;  %v340_v50 = vmul.f32 0.015625, %v276_v21  ;;  %v627_v56 = vsel %vm547_vm15, %v626_v45, %v622_v13 }
 0x10a   :  { %v323_v2 = vmul.f32 0.015625, %v225_v48 }
 0x10b   :  { %v784_v53 = vrot.slane %v340_v50, %v1475_v34 }
 0x10c   :  { %v700_v9 = vrot.slane %v323_v2, %v1472_v33  ;;  %v228_v54 = vpop.xlane.xlu1 %227  ;;  %v534_v33 = vsel %vm533_vm13, %v532_v7, %v527_v15 }
 0x10d   :  { %v132_v12 = vpop.xlane.xlu0 %131  ;;  %v324_v14 = vmul.f32 0.015625, %v228_v54  ;;  %v785_v28 = vsel %vm547_vm15, %v784_v53, %v780_v23  ;;  %v541_v11 = vsel %vm540_vm14, %v539_v10, %v534_v33 }
 0x10e   :  { %v292_v55 = vmul.f32 0.015625, %v132_v12  ;;  %v788_v18 = vsel %vm786_vm0, %v785_v28, %v627_v56  ;;  %v701_v27 = vsel %vm540_vm14, %v700_v9, %v696_v20 }
 0x10f   :  { %v705_v25 = vrot.slane %v324_v14, %v1475_v34  ;;  %855 = vmatprep.mubr.f32.mxu0 %v788_v18 }
 0x110   :  { %v546_v26 = vrot.slane %v292_v55, %v1475_v34  ;;  %v890_v34 = vld [vmem:[%s1590_s2] ss:$0 sm:$0xff] }
 0x111   :  { %v706_v29 = vsel %vm547_vm15, %v705_v25, %v701_v27 }
 0x112   :  { %v548_v58 = vsel %vm547_vm15, %v546_v26, %v541_v11 }
 0x113   :  { %v787_v32 = vsel %vm786_vm0, %v706_v29, %v548_v58 }
 0x114   :  { %856 = vmatmul.mubr.f32.vlgmr.msra.gmra.mrb[0].mxu0 %v787_v32 }
 0x1e7   :  { %v923_v59 = vpop.f32.mrb[0].mxu0 }
 0x1e8   :  { %v924_v19 = vpop.f32.mrb[1].mxu0 }
 0x1e9   :  { %v925_v38 = vadd.f32 %v924_v19, %v923_v59 }
 0x1eb   :  { %v861_v5 = vadd.f32 %v925_v38, %v341_v37 }
 0x1ed   :  { %862 = vst [vmem:[#allocation2] sm:$0x3] %v861_v5 }
 0x1f4   :  { %v866_v17 = vld [vmem:[#allocation2] sm:$0x3] }
 0x1f5   :  { %v874_v39 = vadd.f32 %v890_v34, %v866_v17 }
 0x1f7   :  { %875 = vst [vmem:[#allocation3] sm:$0x3] %v874_v39 }
 0x1f8   :  { %971 = shalt.err (!%p968_p4)
}
 0x1f9   :  { %s972_s19 = scalar_lea.hbm %s1591_s3, 32 }
 0x1fa   :  { %p973_p5 = scmp.ne.s32.totalorder %s1591_s3, %s972_s19  ;;  %p976_p6 = scmp.lt.u32.totalorder %s972_s19, %s1591_s3 }
 0x1fc   :  { %p978_p7 = pnand %p976_p6, %p973_p5 }
 0x1fe   :  { %981 = shalt.err (!%p978_p7)
}
 0x1ff   :  { %885 = dma.vmem_to_hbm [thread:$0]  %s883_s15, 32, %s1591_s3, [#allocation4]  }
 0x200   :  { %982 = dma.done.wait [#allocation4], 32  }
 0x201   :  { %983 = vsyncadd [#allocation4], 4294967264 }
 0x202   :  { %889 = vsyncpa [#allocation4], 1 }

</bundles_post_ra>
